<compile_context>
chip_gen: v6e
topology: v6e:2x2x1
jax: 0.10.0
libtpu: 0.0.40
codegen_flags: <defaults>
</compile_context>

<pallas_src>
import jax
import jax.numpy as jnp
from jax.experimental import pallas as pl
from jax.experimental.pallas import tpu as pltpu

LANE = 128
SUBLANE = 8


def _round_up(x, m):
    return ((x + m - 1) // m) * m


def actor_kernel(x_ref,
                 w1_ref, b1_ref,
                 w2_ref, b2_ref,
                 w3_ref, b3_ref,
                 w4_ref, b4_ref,
                 o_ref):
    """Fused 4-layer MLP (+ReLU/tanh) for one batch tile. Everything in VMEM.

    Weights arrive already padded to lane-dense widths and (optionally) cast
    to bf16; dots accumulate in f32, elementwise math stays f32.
    """
    cdt = w1_ref.dtype  # MXU-feed dtype (f32 or bf16)
    x = x_ref[...]

    h = jnp.dot(x.astype(cdt), w1_ref[...], preferred_element_type=jnp.float32)
    h = jnp.maximum(h + b1_ref[...], 0.0)

    h = jnp.dot(h.astype(cdt), w2_ref[...], preferred_element_type=jnp.float32)
    h = jnp.maximum(h + b2_ref[...], 0.0)

    h = jnp.dot(h.astype(cdt), w3_ref[...], preferred_element_type=jnp.float32)
    h = jnp.maximum(h + b3_ref[...], 0.0)

    h = jnp.dot(h.astype(cdt), w4_ref[...], preferred_element_type=jnp.float32)
    o_ref[...] = jnp.tanh(h + b4_ref[...]).astype(o_ref.dtype)


def actor_forward(x, params, *, block_batch=None, use_bf16=False):
    """x: (B, state_dim) float32.  params: dict of (w1,b1,...,w4,b4).

    Weights are stored transposed vs. PyTorch, i.e. (in_dim, out_dim), so the
    kernel computes y = x @ W + b.  Returns (B, action_dim) float32.
    """
    B, state_dim = x.shape
    mid_dim = params["w1"].shape[1]
    action_dim = params["w4"].shape[1]

    mid_p = _round_up(mid_dim, LANE)
    act_p = _round_up(action_dim, LANE)

    f32 = jnp.float32
    cdt = jnp.bfloat16 if use_bf16 else f32

    def pad2(a, rows, cols, dtype):
        out = jnp.zeros((rows, cols), dtype)
        return out.at[: a.shape[0], : a.shape[1]].set(a.astype(dtype))

    # Zero-padded (exactly equivalent) lane-dense weights/biases.
    w1 = pad2(params["w1"], state_dim, mid_p, cdt)
    w2 = pad2(params["w2"], mid_p, mid_p, cdt)
    w3 = pad2(params["w3"], mid_p, mid_p, cdt)
    w4 = pad2(params["w4"], mid_p, act_p, cdt)
    b1 = pad2(params["b1"], 1, mid_p, f32)
    b2 = pad2(params["b2"], 1, mid_p, f32)
    b3 = pad2(params["b3"], 1, mid_p, f32)
    b4 = pad2(params["b4"], 1, act_p, f32)

    xc = x.astype(cdt)

    # Batch tile: 8-aligned, <= 512 rows, and >= 2 grid steps whenever B
    # allows it (pipeline overlap + v7x dual-TC).  Fits easily in v7x's
    # 64 MiB VMEM (out tile 512x128xf32 = 256 KiB, weights ~a few hundred KiB).
    if block_batch is None:
        if B <= SUBLANE:
            bm = B
        else:
            bm = min(512, _round_up(pl.cdiv(B, 2), SUBLANE))
    else:
        bm = block_batch
    grid = (pl.cdiv(B, bm),)

    x_spec = pl.BlockSpec((bm, state_dim), lambda i: (i, 0))
    out_spec = pl.BlockSpec((bm, act_p), lambda i: (i, 0))

    # Constant index maps => fetched once, VMEM-resident across all grid steps.
    def resident(a):
        return pl.BlockSpec(a.shape, lambda i: (0,) * a.ndim)

    flops = 2 * B * (state_dim * mid_p + 2 * mid_p * mid_p + mid_p * act_p)
    weight_bytes = sum(int(a.size) * a.dtype.itemsize
                       for a in (w1, w2, w3, w4, b1, b2, b3, b4))
    bytes_accessed = int(xc.size) * xc.dtype.itemsize + B * act_p * 4 + weight_bytes
    cost = pl.CostEstimate(flops=flops,
                           transcendentals=B * act_p,
                           bytes_accessed=bytes_accessed)

    out_padded = pl.pallas_call(
        actor_kernel,
        out_shape=jax.ShapeDtypeStruct((B, act_p), jnp.float32),
        grid_spec=pltpu.PrefetchScalarGridSpec(
            num_scalar_prefetch=0,
            grid=grid,
            in_specs=[
                x_spec,
                resident(w1), resident(b1),
                resident(w2), resident(b2),
                resident(w3), resident(b3),
                resident(w4), resident(b4),
            ],
            out_specs=out_spec,
        ),
        compiler_params=pltpu.CompilerParams(
            dimension_semantics=("parallel",)),
        cost_estimate=cost,
    )(xc, w1, b1, w2, b2, w3, b3, w4, b4)

    return out_padded[:, :action_dim]


def init_actor_params(key, state_dim, mid_dim, action_dim):
    """Deterministic synthetic init (PyTorch-Linear-like uniform fan-in scaling)."""
    ks = jax.random.split(key, 8)

    def linear(kw, kb, fan_in, fan_out):
        bound = 1.0 / jnp.sqrt(jnp.float32(fan_in))
        # stored as (in_dim, out_dim) == PyTorch weight.T
        w = jax.random.uniform(kw, (fan_in, fan_out), jnp.float32, -bound, bound)
        b = jax.random.uniform(kb, (1, fan_out), jnp.float32, -bound, bound)
        return w, b

    w1, b1 = linear(ks[0], ks[1], state_dim, mid_dim)
    w2, b2 = linear(ks[2], ks[3], mid_dim, mid_dim)
    w3, b3 = linear(ks[4], ks[5], mid_dim, mid_dim)
    w4, b4 = linear(ks[6], ks[7], mid_dim, action_dim)
    return {"w1": w1, "b1": b1, "w2": w2, "b2": b2,
            "w3": w3, "b3": b3, "w4": w4, "b4": b4}


def actor_reference(x, p):
    """Pure-JAX reference mirroring the PyTorch forward."""
    h = jnp.maximum(x @ p["w1"] + p["b1"], 0.0)
    h = jnp.maximum(h @ p["w2"] + p["b2"], 0.0)
    h = jnp.maximum(h @ p["w3"] + p["b3"], 0.0)
    return jnp.tanh(h @ p["w4"] + p["b4"])


if __name__ == "__main__":
    # Small shapes consistent with the module's constructor.
    batch, state_dim, mid_dim, num_actions = 8, 16, 32, 4

    key = jax.random.PRNGKey(0)
    k_params, k_x, k_x2 = jax.random.split(key, 3)
    params = init_actor_params(k_params, state_dim, mid_dim, num_actions)

    # 1) Small batch, f32 path (exact vs reference).
    x = jax.random.normal(k_x, (batch, state_dim), jnp.float32)
    out = jax.block_until_ready(actor_forward(x, params))
    ref = actor_reference(x, params)
    assert out.shape == (batch, num_actions)
    assert jnp.allclose(out, ref, atol=1e-5, rtol=1e-5), "f32 kernel mismatch"

    # 2) Tiled path: batch not a multiple of the tile, grid >= 2 (exercises
    #    partial-block masking and the pipelined x stream).
    xb = jax.random.normal(k_x2, (300, state_dim), jnp.float32)
    outb = jax.block_until_ready(actor_forward(xb, params))
    refb = actor_reference(xb, params)
    assert outb.shape == (300, num_actions)
    assert jnp.allclose(outb, refb, atol=1e-5, rtol=1e-5), "tiled kernel mismatch"

    # 3) bf16 MXU-feed path (v6e/v7x perf option): f32 accumulation, loose tol.
    outbf = jax.block_until_ready(actor_forward(xb, params, use_bf16=True))
    assert jnp.allclose(outbf, refb, atol=1e-1, rtol=1e-1), "bf16 path mismatch"

    print("KERNEL_OK")
</pallas_src>

<mosaic_0001>
module attributes {stable_mosaic.version = 11 : i64} {
  func.func @actor_kernel(%arg0: i32, %arg1: memref<8x16xf32, #tpu.memory_space<vmem>>, %arg2: memref<16x128xf32, #tpu.memory_space<vmem>>, %arg3: memref<1x128xf32, #tpu.memory_space<vmem>>, %arg4: memref<128x128xf32, #tpu.memory_space<vmem>>, %arg5: memref<1x128xf32, #tpu.memory_space<vmem>>, %arg6: memref<128x128xf32, #tpu.memory_space<vmem>>, %arg7: memref<1x128xf32, #tpu.memory_space<vmem>>, %arg8: memref<128x128xf32, #tpu.memory_space<vmem>>, %arg9: memref<1x128xf32, #tpu.memory_space<vmem>>, %arg10: memref<8x128xf32, #tpu.memory_space<vmem>>) attributes {dimension_semantics = [#tpu.dimension_semantics<parallel>], iteration_bounds = array<i64: 1>, scalar_prefetch = 0 : i64, scratch_operands = 0 : i64, tpu.core_type = #tpu.core_type<tc>, window_params = [{transform_indices = @transform_0, window_bounds = array<i64: 8, 16>}, {pipeline_mode = #tpu.pipeline_mode<synchronous>, transform_indices = @transform_1, window_bounds = array<i64: 16, 128>}, {pipeline_mode = #tpu.pipeline_mode<synchronous>, transform_indices = @transform_2, window_bounds = array<i64: 1, 128>}, {pipeline_mode = #tpu.pipeline_mode<synchronous>, transform_indices = @transform_3, window_bounds = array<i64: 128, 128>}, {pipeline_mode = #tpu.pipeline_mode<synchronous>, transform_indices = @transform_4, window_bounds = array<i64: 1, 128>}, {pipeline_mode = #tpu.pipeline_mode<synchronous>, transform_indices = @transform_5, window_bounds = array<i64: 128, 128>}, {pipeline_mode = #tpu.pipeline_mode<synchronous>, transform_indices = @transform_6, window_bounds = array<i64: 1, 128>}, {pipeline_mode = #tpu.pipeline_mode<synchronous>, transform_indices = @transform_7, window_bounds = array<i64: 128, 128>}, {pipeline_mode = #tpu.pipeline_mode<synchronous>, transform_indices = @transform_8, window_bounds = array<i64: 1, 128>}, {transform_indices = @transform_9, window_bounds = array<i64: 8, 128>}]} {
    %c0 = arith.constant 0 : index
    %c0_0 = arith.constant 0 : index
    %0 = vector.load %arg1[%c0, %c0_0] : memref<8x16xf32, #tpu.memory_space<vmem>>, vector<8x16xf32>
    %c0_1 = arith.constant 0 : index
    %c0_2 = arith.constant 0 : index
    %1 = vector.load %arg2[%c0_1, %c0_2] : memref<16x128xf32, #tpu.memory_space<vmem>>, vector<16x128xf32>
    %cst = arith.constant dense<0.000000e+00> : vector<8x128xf32>
    %2 = tpu.matmul %0, %1, %cst {dimension_numbers = #tpu.dot_dimension_numbers<[1], [0], [0], [1], [0, 0, 1, 1], [], []>} : vector<8x16xf32>, vector<16x128xf32>, vector<8x128xf32> -> vector<8x128xf32>
    %c0_3 = arith.constant 0 : index
    %c0_4 = arith.constant 0 : index
    %3 = vector.load %arg3[%c0_3, %c0_4] : memref<1x128xf32, #tpu.memory_space<vmem>>, vector<1x128xf32>
    %4 = vector.broadcast %3 : vector<1x128xf32> to vector<8x128xf32>
    %5 = arith.addf %2, %4 : vector<8x128xf32>
    %cst_5 = arith.constant 0.000000e+00 : f32
    %6 = vector.broadcast %cst_5 : f32 to vector<8x128xf32>
    %7 = arith.maximumf %5, %6 : vector<8x128xf32>
    %c0_6 = arith.constant 0 : index
    %c0_7 = arith.constant 0 : index
    %8 = vector.load %arg4[%c0_6, %c0_7] : memref<128x128xf32, #tpu.memory_space<vmem>>, vector<128x128xf32>
    %cst_8 = arith.constant dense<0.000000e+00> : vector<8x128xf32>
    %9 = tpu.matmul %7, %8, %cst_8 {dimension_numbers = #tpu.dot_dimension_numbers<[1], [0], [0], [1], [0, 0, 1, 1], [], []>} : vector<8x128xf32>, vector<128x128xf32>, vector<8x128xf32> -> vector<8x128xf32>
    %c0_9 = arith.constant 0 : index
    %c0_10 = arith.constant 0 : index
    %10 = vector.load %arg5[%c0_9, %c0_10] : memref<1x128xf32, #tpu.memory_space<vmem>>, vector<1x128xf32>
    %11 = vector.broadcast %10 : vector<1x128xf32> to vector<8x128xf32>
    %12 = arith.addf %9, %11 : vector<8x128xf32>
    %cst_11 = arith.constant 0.000000e+00 : f32
    %13 = vector.broadcast %cst_11 : f32 to vector<8x128xf32>
    %14 = arith.maximumf %12, %13 : vector<8x128xf32>
    %c0_12 = arith.constant 0 : index
    %c0_13 = arith.constant 0 : index
    %15 = vector.load %arg6[%c0_12, %c0_13] : memref<128x128xf32, #tpu.memory_space<vmem>>, vector<128x128xf32>
    %cst_14 = arith.constant dense<0.000000e+00> : vector<8x128xf32>
    %16 = tpu.matmul %14, %15, %cst_14 {dimension_numbers = #tpu.dot_dimension_numbers<[1], [0], [0], [1], [0, 0, 1, 1], [], []>} : vector<8x128xf32>, vector<128x128xf32>, vector<8x128xf32> -> vector<8x128xf32>
    %c0_15 = arith.constant 0 : index
    %c0_16 = arith.constant 0 : index
    %17 = vector.load %arg7[%c0_15, %c0_16] : memref<1x128xf32, #tpu.memory_space<vmem>>, vector<1x128xf32>
    %18 = vector.broadcast %17 : vector<1x128xf32> to vector<8x128xf32>
    %19 = arith.addf %16, %18 : vector<8x128xf32>
    %cst_17 = arith.constant 0.000000e+00 : f32
    %20 = vector.broadcast %cst_17 : f32 to vector<8x128xf32>
    %21 = arith.maximumf %19, %20 : vector<8x128xf32>
    %c0_18 = arith.constant 0 : index
    %c0_19 = arith.constant 0 : index
    %22 = vector.load %arg8[%c0_18, %c0_19] : memref<128x128xf32, #tpu.memory_space<vmem>>, vector<128x128xf32>
    %cst_20 = arith.constant dense<0.000000e+00> : vector<8x128xf32>
    %23 = tpu.matmul %21, %22, %cst_20 {dimension_numbers = #tpu.dot_dimension_numbers<[1], [0], [0], [1], [0, 0, 1, 1], [], []>} : vector<8x128xf32>, vector<128x128xf32>, vector<8x128xf32> -> vector<8x128xf32>
    %c0_21 = arith.constant 0 : index
    %c0_22 = arith.constant 0 : index
    %24 = vector.load %arg9[%c0_21, %c0_22] : memref<1x128xf32, #tpu.memory_space<vmem>>, vector<1x128xf32>
    %25 = vector.broadcast %24 : vector<1x128xf32> to vector<8x128xf32>
    %26 = arith.addf %23, %25 : vector<8x128xf32>
    %27 = math.tanh %26 : vector<8x128xf32>
    %c0_23 = arith.constant 0 : index
    %c0_24 = arith.constant 0 : index
    %28 = vector.load %arg10[%c0_23, %c0_24] : memref<8x128xf32, #tpu.memory_space<vmem>>, vector<8x128xf32>
    tpu.vector_store %arg10[%c0_23, %c0_24], %27 {strides = array<i32>} : memref<8x128xf32, #tpu.memory_space<vmem>>, vector<8x128xf32>,
    return
  }
  func.func @transform_0(%arg0: i32) -> (i32, i32) {
    %c0_i32 = arith.constant 0 : i32
    %c0_i32_0 = arith.constant 0 : i32
    return %arg0, %c0_i32 : i32, i32
  }
  func.func @transform_1(%arg0: i32) -> (i32, i32) {
    %c0_i32 = arith.constant 0 : i32
    %c0_i32_0 = arith.constant 0 : i32
    %c0_i32_1 = arith.constant 0 : i32
    return %c0_i32, %c0_i32_0 : i32, i32
  }
  func.func @transform_2(%arg0: i32) -> (i32, i32) {
    %c0_i32 = arith.constant 0 : i32
    %c0_i32_0 = arith.constant 0 : i32
    %c0_i32_1 = arith.constant 0 : i32
    return %c0_i32, %c0_i32_0 : i32, i32
  }
  func.func @transform_3(%arg0: i32) -> (i32, i32) {
    %c0_i32 = arith.constant 0 : i32
    %c0_i32_0 = arith.constant 0 : i32
    %c0_i32_1 = arith.constant 0 : i32
    return %c0_i32, %c0_i32_0 : i32, i32
  }
  func.func @transform_4(%arg0: i32) -> (i32, i32) {
    %c0_i32 = arith.constant 0 : i32
    %c0_i32_0 = arith.constant 0 : i32
    %c0_i32_1 = arith.constant 0 : i32
    return %c0_i32, %c0_i32_0 : i32, i32
  }
  func.func @transform_5(%arg0: i32) -> (i32, i32) {
    %c0_i32 = arith.constant 0 : i32
    %c0_i32_0 = arith.constant 0 : i32
    %c0_i32_1 = arith.constant 0 : i32
    return %c0_i32, %c0_i32_0 : i32, i32
  }
  func.func @transform_6(%arg0: i32) -> (i32, i32) {
    %c0_i32 = arith.constant 0 : i32
    %c0_i32_0 = arith.constant 0 : i32
    %c0_i32_1 = arith.constant 0 : i32
    return %c0_i32, %c0_i32_0 : i32, i32
  }
  func.func @transform_7(%arg0: i32) -> (i32, i32) {
    %c0_i32 = arith.constant 0 : i32
    %c0_i32_0 = arith.constant 0 : i32
    %c0_i32_1 = arith.constant 0 : i32
    return %c0_i32, %c0_i32_0 : i32, i32
  }
  func.func @transform_8(%arg0: i32) -> (i32, i32) {
    %c0_i32 = arith.constant 0 : i32
    %c0_i32_0 = arith.constant 0 : i32
    %c0_i32_1 = arith.constant 0 : i32
    return %c0_i32, %c0_i32_0 : i32, i32
  }
  func.func @transform_9(%arg0: i32) -> (i32, i32) {
    %c0_i32 = arith.constant 0 : i32
    %c0_i32_0 = arith.constant 0 : i32
    return %arg0, %c0_i32 : i32, i32
  }
}

</mosaic_0001>

<bundles_post_ra>
// kernel: tpu_custom_call.1
= control target key start
LH: loop header
LB: loop body
LE: loop exit
PB: predicated region body
PF: predicated region fallthrough
CT: control target
= control target key end

     0   :  { %14 = vsyncpa [#allocation3], 0  ;;  %s955_s0 = inlined_call_operand.hbm [shape: f32[8,16], index: 0, kind: input, shape index: {}]   ;;  %s956_s1 = inlined_call_operand.hbm [shape: f32[16,128], index: 1, kind: input, shape index: {}]   ;;  %s957_s2 = inlined_call_operand.vmem [shape: f32[1,128], index: 2, kind: input, shape index: {}]   ;;  %s958_s3 = inlined_call_operand.hbm [shape: f32[128,128], index: 3, kind: input, shape index: {}]   ;;  %s959_s4 = inlined_call_operand.vmem [shape: f32[1,128], index: 4, kind: input, shape index: {}]   ;;  %s960_s5 = inlined_call_operand.hbm [shape: f32[128,128], index: 5, kind: input, shape index: {}]   ;;  %s961_s6 = inlined_call_operand.vmem [shape: f32[1,128], index: 6, kind: input, shape index: {}]   ;;  %s962_s7 = inlined_call_operand.hbm [shape: f32[128,128], index: 7, kind: input, shape index: {}]   ;;  %s963_s8 = inlined_call_operand.vmem [shape: f32[1,128], index: 8, kind: input, shape index: {}]   ;;  %s964_s9 = inlined_call_operand.hbm [shape: f32[8,128], index: 9, kind: output, shape index: {}]  }
   0x1   :  { %15 = vsyncpa [#allocation6], 0 }
   0x2   :  { %16 = vsyncpa [#allocation9], 0 }
   0x3   :  { %17 = vsyncpa [#allocation4], 0  ;;  %s795_s30 = smov [#allocation5]  }
   0x4   :  { %s33_s10 = sshll.u32 %s795_s30, 4  ;;  %s34_s10 = int_to_ptr.vmem [resolvable:$true] %s33_s10 }
   0x5   :  { %s675_s11 = scalar_lea.vmem %s34_s10, 256  ;;  %p680_p1 = scmp.lt.s32.totalorder %s34_s10, %s34_s10 }
   0x6   :  { %p676_p0 = scmp.ne.s32.totalorder %s34_s10, %s675_s11  ;;  %p681_p2 = scmp.lt.s32.totalorder %s675_s11, %s675_s11 }
   0x8   :  { %p682_p3 = por %p681_p2, %p680_p1 }
   0xa   :  { %p683_p4 = pnand %p682_p3, %p676_p0 }
   0xc   :  { %686 = shalt.err (!%p683_p4)
}
   0xd   :  { %s796_s12 = smov 128   ;;  %s797_s13 = smov 8  }
   0xe   :  { %39 = dma.hbm_to_vmem [thread:$0]  %s956_s1, 256, %s34_s10, [#allocation6], %s796_s12, %s796_s12, %s797_s13  }
   0xf   :  { %s798_s16 = smov [#allocation8]   ;;  %s799_s18 = smov [#allocation2]  }
  0x10   :  { %s61_s17 = sshll.u32 %s798_s16, 4  ;;  %s24_s19 = sshll.u32 %s799_s18, 4  ;;  %s62_s17 = int_to_ptr.vmem [resolvable:$true] %s61_s17  ;;  %s25_s19 = int_to_ptr.vmem [resolvable:$true] %s24_s19 }
  0x11   :  { %s695_s20 = scalar_lea.vmem %s62_s17, 2048  ;;  %p700_p6 = scmp.lt.s32.totalorder %s62_s17, %s62_s17 }
  0x12   :  { %p696_p5 = scmp.ne.s32.totalorder %s62_s17, %s695_s20  ;;  %p701_p7 = scmp.lt.s32.totalorder %s695_s20, %s695_s20 }
  0x14   :  { %p702_p8 = por %p701_p7, %p700_p6 }
  0x16   :  { %p703_p9 = pnand %p702_p8, %p696_p5 }
  0x18   :  { %706 = shalt.err (!%p703_p9)
}
  0x19   :  { %67 = dma.hbm_to_vmem [thread:$0]  %s960_s5, 2048, %s62_s17, [#allocation9], %s796_s12, %s796_s12, %s797_s13  }
  0x1a   :  { %s715_s1 = scalar_lea.vmem %s25_s19, 128  ;;  %p720_p11 = scmp.lt.s32.totalorder %s25_s19, %s25_s19 }
  0x1b   :  { %p716_p10 = scmp.ne.s32.totalorder %s25_s19, %s715_s1  ;;  %p721_p12 = scmp.lt.s32.totalorder %s715_s1, %s715_s1 }
  0x1d   :  { %p722_p13 = por %p721_p12, %p720_p11 }
  0x1f   :  { %p723_p0 = pnand %p722_p13, %p716_p10 }
  0x21   :  { %726 = shalt.err (!%p723_p0)
}
  0x22   :  { %27 = dma.hbm_to_vmem [thread:$0]  %s955_s0, 128, %s25_s19, [#allocation3]  }
  0x23   :  { %s800_s25 = smov [#allocation7]   ;;  %s801_s27 = smov [#allocation10]  }
  0x24   :  { %s47_s26 = sshll.u32 %s800_s25, 4  ;;  %s75_s28 = sshll.u32 %s801_s27, 4  ;;  %s48_s26 = int_to_ptr.vmem [resolvable:$true] %s47_s26  ;;  %s76_s28 = int_to_ptr.vmem [resolvable:$true] %s75_s28 }
  0x25   :  { %s735_s29 = scalar_lea.vmem %s48_s26, 2048  ;;  %p740_p2 = scmp.lt.s32.totalorder %s48_s26, %s48_s26 }
  0x26   :  { %p736_p1 = scmp.ne.s32.totalorder %s48_s26, %s735_s29  ;;  %p741_p3 = scmp.lt.s32.totalorder %s735_s29, %s735_s29 }
  0x28   :  { %p742_p4 = por %p741_p3, %p740_p2 }
  0x2a   :  { %p743_p5 = pnand %p742_p4, %p736_p1 }
  0x2c   :  { %746 = shalt.err (!%p743_p5)
}
  0x2d   :  { %53 = dma.hbm_to_vmem [thread:$0]  %s958_s3, 2048, %s48_s26, [#allocation6], %s796_s12, %s796_s12, %s797_s13  }
  0x2e   :  { %s755_s0 = scalar_lea.vmem %s76_s28, 2048  ;;  %p760_p7 = scmp.lt.s32.totalorder %s76_s28, %s76_s28 }
  0x2f   :  { %p756_p6 = scmp.ne.s32.totalorder %s76_s28, %s755_s0  ;;  %p761_p8 = scmp.lt.s32.totalorder %s755_s0, %s755_s0 }
  0x31   :  { %p762_p9 = por %p761_p8, %p760_p7 }
  0x33   :  { %p763_p10 = pnand %p762_p9, %p756_p6 }
  0x35   :  { %766 = shalt.err (!%p763_p10)
}
  0x36   :  { %81 = dma.hbm_to_vmem [thread:$0]  %s962_s7, 2048, %s76_s28, [#allocation9], %s796_s12, %s796_s12, %s797_s13  }
  0x37   :  { %787 = dma.done.wait [#allocation3], 128  }
  0x38   :  { %788 = vsyncadd [#allocation3], 4294967168 }
  0x39   :  { %789 = dma.done.wait [#allocation6], 2304  }
  0x3a   :  { %790 = vsyncadd [#allocation6], 4294964992 }
  0x3b   :  { %791 = dma.done.wait [#allocation9], 4096  }
  0x3c   :  { %792 = vsyncadd [#allocation9], 4294963200  ;;  %v802_v0 = vmov 0.0   ;;  %vm803_vm0 = vmmov 0   ;;  %v101_v1 = vld [vmem:[#allocation5 + $0x8] sm:$0xff]  ;;  %v100_v2 = vld [vmem:[#allocation5] sm:$0xff] }
  0x3d   :  { %543 = vmatprep.subr.mxu0 %v802_v0  ;;  %547 = vmatprep.mubr.msk.f32.mxu0 %vm803_vm0, %v802_v0  ;;  %v99_v3 = vld [vmem:[#allocation2] sm:$0xff]  ;;  %vm109_vm1 = vcmask 130048   ;;  %v199_v4 = vld [vmem:[#allocation7 + $0x78] sm:$0xff]  ;;  %v198_v5 = vld [vmem:[#allocation7 + $0x70] sm:$0xff]  ;;  %s804_s16 = smov [#allocation11]  }
  0x3e   :  { %550 = vmatprep.subr.mxu1 %v802_v0  ;;  %582 = vmatprep.mubr.msk.f32.mxu1 %vm803_vm0, %v802_v0  ;;  %v197_v6 = vld [vmem:[#allocation7 + $0x68] sm:$0xff]  ;;  %v196_v7 = vld [vmem:[#allocation7 + $0x60] sm:$0xff]  ;;  %v195_v8 = vld [vmem:[#allocation7 + $0x58] sm:$0xff]  ;;  %s473_s17 = sshll.u32 %s804_s16, 4  ;;  %s474_s17 = int_to_ptr.vmem [resolvable:$true] %s473_s17 }
  0x3f   :  { %544 = vmatpush3.msra.mxu0 %v101_v1  ;;  %551 = vmatpush3.msra.mxu1 %v199_v4  ;;  %v194_v9 = vld [vmem:[#allocation7 + $0x50] sm:$0xff]  ;;  %v193_v10 = vld [vmem:[#allocation7 + $0x48] sm:$0xff]  ;;  %v192_v11 = vld [vmem:[#allocation7 + $0x40] sm:$0xff]  ;;  %s767_s18 = scalar_lea.vmem %s474_s17, 128  ;;  %p772_p12 = scmp.lt.s32.totalorder %s474_s17, %s474_s17 }
  0x40   :  { %545 = vmatprep.subr.mxu0 %v802_v0  ;;  %552 = vmatprep.subr.mxu1 %v802_v0  ;;  %v191_v12 = vld [vmem:[#allocation7 + $0x38] sm:$0xff]  ;;  %v190_v13 = vld [vmem:[#allocation7 + $0x30] sm:$0xff]  ;;  %v189_v14 = vld [vmem:[#allocation7 + $0x28] sm:$0xff]  ;;  %p768_p11 = scmp.ne.s32.totalorder %s474_s17, %s767_s18  ;;  %p773_p13 = scmp.lt.s32.totalorder %s767_s18, %s767_s18 }
  0x41   :  { %546 = vmatpush3.msra.mxu0 %v100_v2  ;;  %553 = vmatpush3.msra.mxu1 %v198_v5  ;;  %v188_v15 = vld [vmem:[#allocation7 + $0x20] sm:$0xff]  ;;  %v187_v16 = vld [vmem:[#allocation7 + $0x18] sm:$0xff]  ;;  %v186_v17 = vld [vmem:[#allocation7 + $0x10] sm:$0xff] }
  0x42   :  { %548 = vmatmul.mubr.msk.f32.vlgmr.msra.gmra.mxu0 %vm109_vm1, %v99_v3  ;;  %554 = vmatprep.subr.mxu1 %v802_v0  ;;  %v185_v18 = vld [vmem:[#allocation7 + $0x8] sm:$0xff]  ;;  %v184_v19 = vld [vmem:[#allocation7] sm:$0xff]  ;;  %v293_v20 = vld [vmem:[#allocation8 + $0x78] sm:$0xff]  ;;  %p774_p0 = por %p773_p13, %p772_p12 }
  0x43   :  { %585 = vmatprep.subr.mxu0 %v802_v0  ;;  %555 = vmatpush3.msra.mxu1 %v197_v6  ;;  %v292_v21 = vld [vmem:[#allocation8 + $0x70] sm:$0xff]  ;;  %v291_v22 = vld [vmem:[#allocation8 + $0x68] sm:$0xff]  ;;  %v290_v23 = vld [vmem:[#allocation8 + $0x60] sm:$0xff] }
  0x44   :  { %617 = vmatprep.mubr.msk.f32.mxu0 %vm803_vm0, %v802_v0  ;;  %556 = vmatprep.subr.mxu1 %v802_v0  ;;  %v289_v24 = vld [vmem:[#allocation8 + $0x58] sm:$0xff]  ;;  %v288_v25 = vld [vmem:[#allocation8 + $0x50] sm:$0xff]  ;;  %v287_v26 = vld [vmem:[#allocation8 + $0x48] sm:$0xff]  ;;  %p775_p1 = pnand %p774_p0, %p768_p11 }
  0x45   :  { %557 = vmatpush3.msra.mxu1 %v196_v7  ;;  %586 = vmatpush3.msra.mxu0 %v293_v20  ;;  %v286_v27 = vld [vmem:[#allocation8 + $0x40] sm:$0xff]  ;;  %v285_v28 = vld [vmem:[#allocation8 + $0x38] sm:$0xff]  ;;  %v284_v29 = vld [vmem:[#allocation8 + $0x30] sm:$0xff] }
  0x46   :  { %558 = vmatprep.subr.mxu1 %v802_v0  ;;  %587 = vmatprep.subr.mxu0 %v802_v0  ;;  %v283_v30 = vld [vmem:[#allocation8 + $0x28] sm:$0xff]  ;;  %v282_v31 = vld [vmem:[#allocation8 + $0x20] sm:$0xff]  ;;  %v281_v32 = vld [vmem:[#allocation8 + $0x18] sm:$0xff] }
  0x47   :  { %559 = vmatpush3.msra.mxu1 %v195_v8  ;;  %588 = vmatpush3.msra.mxu0 %v292_v21  ;;  %v484_v33 = vld [vmem:[%s957_s2] ss:$0 sm:$0xff]  ;;  %v280_v38 = vld [vmem:[#allocation8 + $0x10] sm:$0xff]  ;;  %v278_v40 = vld [vmem:[#allocation8] sm:$0xff] }
  0x48   :  { %560 = vmatprep.subr.mxu1 %v802_v0  ;;  %589 = vmatprep.subr.mxu0 %v802_v0  ;;  %v279_v39 = vld [vmem:[#allocation8 + $0x8] sm:$0xff]  ;;  %v387_v41 = vld [vmem:[#allocation10 + $0x78] sm:$0xff]  ;;  %v386_v42 = vld [vmem:[#allocation10 + $0x70] sm:$0xff] }
  0x49   :  { %561 = vmatpush3.msra.mxu1 %v194_v9  ;;  %590 = vmatpush3.msra.mxu0 %v291_v22  ;;  %v385_v43 = vld [vmem:[#allocation10 + $0x68] sm:$0xff]  ;;  %v384_v44 = vld [vmem:[#allocation10 + $0x60] sm:$0xff]  ;;  %v383_v45 = vld [vmem:[#allocation10 + $0x58] sm:$0xff] }
  0x4a   :  { %562 = vmatprep.subr.mxu1 %v802_v0  ;;  %591 = vmatprep.subr.mxu0 %v802_v0  ;;  %v382_v46 = vld [vmem:[#allocation10 + $0x50] sm:$0xff]  ;;  %v381_v47 = vld [vmem:[#allocation10 + $0x48] sm:$0xff]  ;;  %v380_v48 = vld [vmem:[#allocation10 + $0x40] sm:$0xff] }
  0x4b   :  { %563 = vmatpush3.msra.mxu1 %v193_v10  ;;  %592 = vmatpush3.msra.mxu0 %v290_v23  ;;  %v379_v49 = vld [vmem:[#allocation10 + $0x38] sm:$0xff]  ;;  %v378_v50 = vld [vmem:[#allocation10 + $0x30] sm:$0xff]  ;;  %v377_v51 = vld [vmem:[#allocation10 + $0x28] sm:$0xff] }
  0x4c   :  { %564 = vmatprep.subr.mxu1 %v802_v0  ;;  %593 = vmatprep.subr.mxu0 %v802_v0  ;;  %v376_v52 = vld [vmem:[#allocation10 + $0x20] sm:$0xff]  ;;  %v375_v53 = vld [vmem:[#allocation10 + $0x18] sm:$0xff]  ;;  %v486_v54 = vld [vmem:[%s959_s4] ss:$0 sm:$0xff] }
  0x4d   :  { %565 = vmatpush3.msra.mxu1 %v192_v11  ;;  %594 = vmatpush3.msra.mxu0 %v289_v24  ;;  %v374_v59 = vld [vmem:[#allocation10 + $0x10] sm:$0xff]  ;;  %v373_v60 = vld [vmem:[#allocation10 + $0x8] sm:$0xff]  ;;  %v372_v61 = vld [vmem:[#allocation10] sm:$0xff] }
  0x4e   :  { %566 = vmatprep.subr.mxu1 %v802_v0  ;;  %595 = vmatprep.subr.mxu0 %v802_v0  ;;  %v487_v62 = vld [vmem:[%s961_s6] ss:$0 sm:$0xff] }
  0x4f   :  { %567 = vmatpush3.msra.mxu1 %v191_v12  ;;  %596 = vmatpush3.msra.mxu0 %v288_v25  ;;  %v488_v4 = vld [vmem:[%s963_s8] ss:$0 sm:$0xff] }
  0x50   :  { %568 = vmatprep.subr.mxu1 %v802_v0  ;;  %597 = vmatprep.subr.mxu0 %v802_v0 }
  0x51   :  { %569 = vmatpush3.msra.mxu1 %v190_v13  ;;  %598 = vmatpush3.msra.mxu0 %v287_v26 }
  0x52   :  { %570 = vmatprep.subr.mxu1 %v802_v0  ;;  %599 = vmatprep.subr.mxu0 %v802_v0 }
  0x53   :  { %571 = vmatpush3.msra.mxu1 %v189_v14  ;;  %600 = vmatpush3.msra.mxu0 %v286_v27 }
  0x54   :  { %572 = vmatprep.subr.mxu1 %v802_v0  ;;  %601 = vmatprep.subr.mxu0 %v802_v0 }
  0x55   :  { %573 = vmatpush3.msra.mxu1 %v188_v15  ;;  %602 = vmatpush3.msra.mxu0 %v285_v28 }
  0x56   :  { %574 = vmatprep.subr.mxu1 %v802_v0  ;;  %603 = vmatprep.subr.mxu0 %v802_v0 }
  0x57   :  { %575 = vmatpush3.msra.mxu1 %v187_v16  ;;  %604 = vmatpush3.msra.mxu0 %v284_v29 }
  0x58   :  { %576 = vmatprep.subr.mxu1 %v802_v0  ;;  %605 = vmatprep.subr.mxu0 %v802_v0 }
  0x59   :  { %577 = vmatpush3.msra.mxu1 %v186_v17  ;;  %606 = vmatpush3.msra.mxu0 %v283_v30 }
  0x5a   :  { %578 = vmatprep.subr.mxu1 %v802_v0  ;;  %607 = vmatprep.subr.mxu0 %v802_v0 }
  0x5b   :  { %579 = vmatpush3.msra.mxu1 %v185_v18  ;;  %608 = vmatpush3.msra.mxu0 %v282_v31 }
  0x5c   :  { %580 = vmatprep.subr.mxu1 %v802_v0  ;;  %609 = vmatprep.subr.mxu0 %v802_v0 }
  0x5d   :  { %581 = vmatpush3.msra.mxu1 %v184_v19  ;;  %610 = vmatpush3.msra.mxu0 %v281_v32 }
  0x5e   :  { %620 = vmatprep.subr.mxu1 %v802_v0  ;;  %611 = vmatprep.subr.mxu0 %v802_v0 }
  0x5f   :  { %612 = vmatpush3.msra.mxu0 %v280_v38 }
  0x60   :  { %613 = vmatprep.subr.mxu0 %v802_v0 }
  0x61   :  { %614 = vmatpush3.msra.mxu0 %v279_v39 }
  0x62   :  { %615 = vmatprep.subr.mxu0 %v802_v0 }
  0x63   :  { %616 = vmatpush3.msra.mxu0 %v278_v40 }
 0x102   :  { %v179_v34 = vpop.f32.mrf.mxu0 }
 0x103   :  { %v180_v35 = vadd.f32 %v484_v33, %v179_v34 }
 0x104   :  { %v549_v36 = vpop.f32.mrf.mxu0 }
 0x105   :  { %v183_v37 = vmax.f32 %v180_v35, 0.0 }
 0x107   :  { %583 = vmatmul.mubr.f32.vlgmr.msra.gmra.mxu1 %v183_v37 }
 0x108   :  { %652 = vmatprep.mubr.msk.f32.mxu1 %vm803_vm0, %v802_v0  ;;  %621 = vmatpush3.msra.mxu1 %v387_v41 }
 0x109   :  { %622 = vmatprep.subr.mxu1 %v802_v0 }
 0x10a   :  { %623 = vmatpush3.msra.mxu1 %v386_v42 }
 0x10b   :  { %624 = vmatprep.subr.mxu1 %v802_v0 }
 0x10c   :  { %625 = vmatpush3.msra.mxu1 %v385_v43 }
 0x10d   :  { %626 = vmatprep.subr.mxu1 %v802_v0 }
 0x10e   :  { %627 = vmatpush3.msra.mxu1 %v384_v44 }
 0x10f   :  { %628 = vmatprep.subr.mxu1 %v802_v0 }
 0x110   :  { %629 = vmatpush3.msra.mxu1 %v383_v45 }
 0x111   :  { %630 = vmatprep.subr.mxu1 %v802_v0 }
 0x112   :  { %631 = vmatpush3.msra.mxu1 %v382_v46 }
 0x113   :  { %632 = vmatprep.subr.mxu1 %v802_v0 }
 0x114   :  { %633 = vmatpush3.msra.mxu1 %v381_v47 }
 0x115   :  { %634 = vmatprep.subr.mxu1 %v802_v0 }
 0x116   :  { %635 = vmatpush3.msra.mxu1 %v380_v48 }
 0x117   :  { %636 = vmatprep.subr.mxu1 %v802_v0 }
 0x118   :  { %637 = vmatpush3.msra.mxu1 %v379_v49 }
 0x119   :  { %638 = vmatprep.subr.mxu1 %v802_v0 }
 0x11a   :  { %639 = vmatpush3.msra.mxu1 %v378_v50 }
 0x11b   :  { %640 = vmatprep.subr.mxu1 %v802_v0 }
 0x11c   :  { %641 = vmatpush3.msra.mxu1 %v377_v51 }
 0x11d   :  { %642 = vmatprep.subr.mxu1 %v802_v0 }
 0x11e   :  { %643 = vmatpush3.msra.mxu1 %v376_v52 }
 0x11f   :  { %644 = vmatprep.subr.mxu1 %v802_v0 }
 0x120   :  { %645 = vmatpush3.msra.mxu1 %v375_v53 }
 0x121   :  { %646 = vmatprep.subr.mxu1 %v802_v0 }
 0x122   :  { %647 = vmatpush3.msra.mxu1 %v374_v59 }
 0x123   :  { %648 = vmatprep.subr.mxu1 %v802_v0 }
 0x124   :  { %649 = vmatpush3.msra.mxu1 %v373_v60 }
 0x125   :  { %650 = vmatprep.subr.mxu1 %v802_v0 }
 0x126   :  { %651 = vmatpush3.msra.mxu1 %v372_v61 }
 0x1c7   :  { %v273_v55 = vpop.f32.mrf.mxu1 }
 0x1c8   :  { %v274_v56 = vadd.f32 %v486_v54, %v273_v55 }
 0x1c9   :  { %v584_v57 = vpop.f32.mrf.mxu1 }
 0x1ca   :  { %v277_v58 = vmax.f32 %v274_v56, 0.0 }
 0x1cc   :  { %618 = vmatmul.mubr.f32.vlgmr.msra.gmra.mxu0 %v277_v58 }
 0x28c   :  { %v367_v63 = vpop.f32.mrf.mxu0 }
 0x28d   :  { %v368_v1 = vadd.f32 %v487_v62, %v367_v63 }
 0x28e   :  { %v619_v2 = vpop.f32.mrf.mxu0 }
 0x28f   :  { %v371_v3 = vmax.f32 %v368_v1, 0.0 }
 0x291   :  { %653 = vmatmul.mubr.f32.vlgmr.msra.gmra.mxu1 %v371_v3 }
 0x351   :  { %v461_v5 = vpop.f32.mrf.mxu1 }
 0x352   :  { %v462_v6 = vadd.f32 %v488_v4, %v461_v5 }
 0x353   :  { %v654_v7 = vpop.f32.mrf.mxu1 }
 0x354   :  { %665 = vtanh.f32 %v462_v6 }
 0x361   :  { %v666_v0 = vpop.eup %665 }
 0x362   :  { %466 = vst [vmem:[#allocation11] sm:$0xff] %v666_v0 }
 0x363   :  { %778 = shalt.err (!%p775_p1)
}
 0x364   :  { %476 = dma.vmem_to_hbm [thread:$0]  %s474_s17, 128, %s964_s9, [#allocation4]  }
 0x365   :  { %793 = dma.done.wait [#allocation4], 128  }
 0x366   :  { %794 = vsyncadd [#allocation4], 4294967168 }
 0x367   :  { %480 = vsyncpa [#allocation3], 1 }
 0x368   :  { %481 = vsyncpa [#allocation6], 1 }
 0x369   :  { %482 = vsyncpa [#allocation9], 1 }
 0x36a   :  { %483 = vsyncpa [#allocation4], 1 }

</bundles_post_ra>
